<compile_context>
chip_gen: v6e
topology: v6e:2x2x1
jax: 0.10.0
libtpu: 0.0.40
codegen_flags: <defaults>
</compile_context>

<pallas_src>
import functools

import jax
import jax.numpy as jnp
from jax import lax
from jax.experimental import pallas as pl
from jax.experimental.pallas import tpu as pltpu


def _round_up(x, m):
    return (x + m - 1) // m * m


def _scoped_vmem_limit():
    """Generation-aware scoped-VMEM request (leave headroom for Mosaic internals)."""
    try:
        cap = int(pltpu.get_tpu_info().vmem_capacity_bytes)
    except Exception:
        return 48 << 20                      # safe everywhere (v7x has 64 MiB physical)
    if cap >= (128 << 20):                   # v5e / v6e: 128 MiB physical
        return cap - (24 << 20)              # ~104 MiB
    return max(cap - (16 << 20), (cap * 3) // 4)   # v7x: 64 MiB -> 48 MiB


# ----------------------- single-pass kernel (full T resident) -----------------------


def _scaler_single_kernel(x_ref, out_ref, scale_ref, *, inv_t):
    # Reduce |x| over rows with f32 accumulation.  x_ref is re-read for the multiply
    # instead of keeping the (T, tile_d) value live across the reduce.
    s = jnp.sum(jnp.abs(x_ref[...]), axis=0, keepdims=True, dtype=jnp.float32) * inv_t
    s_out = s.astype(scale_ref.dtype)
    scale_ref[...] = s_out
    inv = pl.reciprocal(s_out.astype(jnp.float32), approx=False)
    out_ref[...] = (x_ref[...] * inv.astype(out_ref.dtype)).astype(out_ref.dtype)


def _single_pass(data, tile_d, vmem_limit):
    t, d = data.shape
    n_d = pl.cdiv(d, tile_d)
    kernel = functools.partial(_scaler_single_kernel, inv_t=1.0 / t)
    return pl.pallas_call(
        kernel,
        grid=(n_d,),
        in_specs=[pl.BlockSpec((t, tile_d), lambda j: (0, j))],
        out_specs=(
            pl.BlockSpec((t, tile_d), lambda j: (0, j)),
            pl.BlockSpec((1, tile_d), lambda j: (0, j)),
        ),
        out_shape=(
            jax.ShapeDtypeStruct((t, d), data.dtype),
            jax.ShapeDtypeStruct((1, d), data.dtype),
        ),
        compiler_params=pltpu.CompilerParams(
            dimension_semantics=("parallel",),
            vmem_limit_bytes=vmem_limit,
        ),
    )(data)


# ------------- fused two-sweep kernel (T tiled; reduce sweep + apply sweep) ----------


def _scaler_fused_kernel(x_ref, out_ref, scale_ref, acc_ref, inv_ref, *,
                         inv_t, n_t, tile_t, t_true, mask_rows):
    s = pl.program_id(1)

    @pl.when(s == 0)
    def _():
        acc_ref[...] = jnp.zeros_like(acc_ref)

    @pl.when(s < n_t)                                    # sweep 1: accumulate sum(|x|)
    def _():
        a = jnp.abs(x_ref[...])
        if mask_rows:                                    # partial last T tile
            rows = s * tile_t + lax.broadcasted_iota(jnp.int32, a.shape, 0)
            a = jnp.where(rows < t_true, a, jnp.zeros_like(a))
        acc_ref[...] += jnp.sum(a, axis=0, keepdims=True, dtype=jnp.float32)

    @pl.when(s == n_t - 1)                               # finalize scale + reciprocal
    def _():
        s_out = (acc_ref[...] * inv_t).astype(scale_ref.dtype)
        scale_ref[...] = s_out
        inv_ref[...] = pl.reciprocal(s_out.astype(jnp.float32), approx=False)

    @pl.when(s >= n_t)                                   # sweep 2: apply reciprocal
    def _():
        out_ref[...] = (x_ref[...] * inv_ref[...].astype(out_ref.dtype)
                        ).astype(out_ref.dtype)


def _fused_two_sweep(data, tile_t, tile_d, vmem_limit):
    t, d = data.shape
    n_t = pl.cdiv(t, tile_t)
    n_d = pl.cdiv(d, tile_d)
    kernel = functools.partial(
        _scaler_fused_kernel, inv_t=1.0 / t, n_t=n_t, tile_t=tile_t,
        t_true=t, mask_rows=(t % tile_t != 0))

    def x_map(j, s):                                     # re-stream same blocks in sweep 2
        return (jnp.where(s < n_t, s, s - n_t), j)

    def out_map(j, s):                                   # park at block 0 during sweep 1
        return (jnp.maximum(s - n_t, 0), j)

    return pl.pallas_call(
        kernel,
        grid=(n_d, 2 * n_t),
        in_specs=[pl.BlockSpec((tile_t, tile_d), x_map)],
        out_specs=(
            pl.BlockSpec((tile_t, tile_d), out_map),
            pl.BlockSpec((1, tile_d), lambda j, s: (0, j)),
        ),
        out_shape=(
            jax.ShapeDtypeStruct((t, d), data.dtype),
            jax.ShapeDtypeStruct((1, d), data.dtype),
        ),
        scratch_shapes=[
            pltpu.VMEM((1, tile_d), jnp.float32),        # running sum(|x|)
            pltpu.VMEM((1, tile_d), jnp.float32),        # 1 / scale
        ],
        compiler_params=pltpu.CompilerParams(
            dimension_semantics=("parallel", "arbitrary"),
            vmem_limit_bytes=vmem_limit,
        ),
    )(data)


# ------------------------------- tile selection --------------------------------------


def _pick_tile_d_single(t, d, itemsize, budget):
    d128 = pl.cdiv(d, 128)
    col_bytes = t * 128 * itemsize                        # one 128-lane full-T slab
    fit_k = max(1, budget // (4 * col_bytes))             # 2x in + 2x out buffers
    min_k = min(d128, max(1, (2048 // itemsize) // 128))  # >= 2 KiB contiguous DMA rows
    tgt_k = max(min_k, (4 << 20) // col_bytes)            # ~4 MiB blocks pipeline well
    k = max(1, min(d128, fit_k, tgt_k))
    # prefer >= 4 grid steps (2 per v7x TensorCore) when D is wide enough
    if pl.cdiv(d128, k) < 4 and d128 >= 4 * min_k:
        k = max(min_k, pl.cdiv(d128, 4))
    k = max(1, min(k, fit_k, d128))
    return k * 128


def _pick_tiles_fused(t, d, itemsize, budget):
    d128 = pl.cdiv(d, 128)
    k = min(d128, max(1, 8192 // (128 * itemsize)))       # aim for >= 8 KiB DMA rows
    # keep >= 2 D-steps (one per v7x core) when rows would stay >= ~4 KiB wide
    if d128 >= 2 * max(1, 4096 // (128 * itemsize)):
        k = min(k, pl.cdiv(d128, 2))
    tile_d = k * 128
    row_bytes = tile_d * itemsize
    fit_t = max(8, budget // (4 * row_bytes))              # 2x in + 2x out buffers
    tgt_t = max(8, (4 << 20) // row_bytes)                  # ~4 MiB blocks
    tile_t = max(8, (min(fit_t, tgt_t) // 8) * 8)
    tile_t = min(tile_t, _round_up(t, 8))
    return tile_t, tile_d


# ------------------------------------ wrapper -----------------------------------------


def scaler_forward(data, keepdim=False, *, force_fused=False,
                   tile_t=None, tile_d=None, vmem_limit_bytes=None):
    """Pallas TPU Scaler.forward for 2-D (T, D) data.

    scale = mean(|data|, dim=0);  returns (data / scale, scale)
      keepdim=False -> scale shape (D,);  keepdim=True -> (1, D)
    """
    if data.ndim != 2:
        raise ValueError(f"expected 2-D (T, D) data, got shape {data.shape}")
    t, d = data.shape
    itemsize = jnp.dtype(data.dtype).itemsize
    vmem_limit = int(vmem_limit_bytes) if vmem_limit_bytes else _scoped_vmem_limit()
    budget = (vmem_limit * 7) // 10                       # slack for Mosaic internals

    d128 = pl.cdiv(d, 128)
    # Single-pass (1 read + 1 write) needs the full-T column slab double-buffered.
    single_fits = 4 * t * 128 * itemsize <= budget

    use_fused = bool(force_fused) or not single_fits
    td_single = None
    if not use_fused:
        td_single = (_round_up(min(int(tile_d), d128 * 128), 128) if tile_d
                     else _pick_tile_d_single(t, d, itemsize, budget))
        # A 1-step grid has no pipelining and idles the 2nd v7x core: tile T instead
        # when the block is big enough to matter.
        if (pl.cdiv(d, td_single) == 1 and t >= 64
                and t * d128 * 128 * itemsize > (2 << 20)):
            use_fused = True

    if use_fused:
        tt_f, td_f = _pick_tiles_fused(t, d, itemsize, budget)
        if tile_t:
            tt_f = max(8, _round_up(min(int(tile_t), _round_up(t, 8)), 8))
        if tile_d:
            td_f = _round_up(min(int(tile_d), d128 * 128), 128)
        out, scale = _fused_two_sweep(data, tt_f, td_f, vmem_limit)
    else:
        out, scale = _single_pass(data, td_single, vmem_limit)

    if keepdim:
        return out, scale
    return out, scale.reshape(d)


# ------------------------------------ reference ---------------------------------------


def _reference(data, keepdim=False):
    x32 = data.astype(jnp.float32)
    scale = jnp.mean(jnp.abs(x32), axis=0).astype(data.dtype)
    out = (data / scale[None, :]).astype(data.dtype)
    if keepdim:
        return out, scale[None, :]
    return out, scale


def _check(out, scale, data, keepdim, atol=1e-5, rtol=1e-5):
    ref_out, ref_scale = _reference(data, keepdim=keepdim)
    assert out.shape == ref_out.shape, (out.shape, ref_out.shape)
    assert scale.shape == ref_scale.shape, (scale.shape, ref_scale.shape)
    assert jnp.allclose(out.astype(jnp.float32), ref_out.astype(jnp.float32),
                        atol=atol, rtol=rtol)
    assert jnp.allclose(scale.astype(jnp.float32), ref_scale.astype(jnp.float32),
                        atol=atol, rtol=rtol)


if __name__ == "__main__":
    k0, k1, k2, k3, k4 = jax.random.split(jax.random.PRNGKey(0), 5)

    # 1) small lane-aligned case (single-pass), keepdim False / True
    data = jax.random.normal(k0, (8, 256), dtype=jnp.float32)
    out, scale = scaler_forward(data)
    jax.block_until_ready(out)
    _check(out, scale, data, keepdim=False)
    out_k, scale_k = scaler_forward(data, keepdim=True)
    jax.block_until_ready(out_k)
    _check(out_k, scale_k, data, keepdim=True)

    # 2) T not a multiple of 8 and D not a multiple of 128 (partial edge tiles,
    #    no wrapper padding / slicing)
    data2 = jax.random.normal(k1, (13, 200), dtype=jnp.float32)
    out2, scale2 = scaler_forward(data2)
    jax.block_until_ready(out2)
    _check(out2, scale2, data2, keepdim=False)

    # 3) fused two-sweep path: multiple T tiles (masked last tile) and 2 D tiles
    data3 = jax.random.normal(k2, (90, 456), dtype=jnp.float32)
    out3, scale3 = scaler_forward(data3, force_fused=True, tile_t=32, tile_d=256)
    jax.block_until_ready(out3)
    _check(out3, scale3, data3, keepdim=False)

    # 4) single-pass with a multi-step D grid
    data4 = jax.random.normal(k3, (32, 1024), dtype=jnp.float32)
    out4, scale4 = scaler_forward(data4, tile_d=256)
    jax.block_until_ready(out4)
    _check(out4, scale4, data4, keepdim=False)

    # 5) bf16 input (f32 accumulation inside the kernel)
    data5 = jax.random.normal(k4, (16, 256), dtype=jnp.bfloat16)
    out5, scale5 = scaler_forward(data5)
    jax.block_until_ready(out5)
    _check(out5, scale5, data5, keepdim=False, atol=5e-2, rtol=5e-2)

    print("KERNEL_OK")
</pallas_src>

<mosaic_0001>
module attributes {stable_mosaic.version = 11 : i64} {
  func.func @_scaler_single_kernel(%arg0: i32, %arg1: memref<8x256xf32, #tpu.memory_space<vmem>>, %arg2: memref<8x256xf32, #tpu.memory_space<vmem>>, %arg3: memref<1x256xf32, #tpu.memory_space<vmem>>) attributes {dimension_semantics = [#tpu.dimension_semantics<parallel>], iteration_bounds = array<i64: 1>, scalar_prefetch = 0 : i64, scratch_operands = 0 : i64, tpu.core_type = #tpu.core_type<tc>, window_params = [{transform_indices = @transform_0, window_bounds = array<i64: 8, 256>}, {transform_indices = @transform_1, window_bounds = array<i64: 8, 256>}, {transform_indices = @transform_2, window_bounds = array<i64: 1, 256>}]} {
    %c0 = arith.constant 0 : index
    %c0_0 = arith.constant 0 : index
    %0 = vector.load %arg1[%c0, %c0_0] : memref<8x256xf32, #tpu.memory_space<vmem>>, vector<8x256xf32>
    %1 = math.absf %0 : vector<8x256xf32>
    %cst = arith.constant dense<0.000000e+00> : vector<256xf32>
    %2 = vector.multi_reduction <add>, %1, %cst [0] : vector<8x256xf32> to vector<256xf32>
    %3 = vector.shape_cast %2 : vector<256xf32> to vector<1x256xf32>
    %cst_1 = arith.constant 1.250000e-01 : f32
    %4 = vector.broadcast %cst_1 : f32 to vector<1x256xf32>
    %5 = arith.mulf %3, %4 : vector<1x256xf32>
    %c0_2 = arith.constant 0 : index
    %c0_3 = arith.constant 0 : index
    %6 = vector.load %arg3[%c0_2, %c0_3] : memref<1x256xf32, #tpu.memory_space<vmem>>, vector<1x256xf32>
    tpu.vector_store %arg3[%c0_2, %c0_3], %5 {strides = array<i32>} : memref<1x256xf32, #tpu.memory_space<vmem>>, vector<1x256xf32>,
    %7 = tpu.reciprocal %5 : vector<1x256xf32> -> vector<1x256xf32>
    %c0_4 = arith.constant 0 : index
    %c0_5 = arith.constant 0 : index
    %8 = vector.load %arg1[%c0_4, %c0_5] : memref<8x256xf32, #tpu.memory_space<vmem>>, vector<8x256xf32>
    %9 = vector.broadcast %7 : vector<1x256xf32> to vector<8x256xf32>
    %10 = arith.mulf %8, %9 : vector<8x256xf32>
    %c0_6 = arith.constant 0 : index
    %c0_7 = arith.constant 0 : index
    %11 = vector.load %arg2[%c0_6, %c0_7] : memref<8x256xf32, #tpu.memory_space<vmem>>, vector<8x256xf32>
    tpu.vector_store %arg2[%c0_6, %c0_7], %10 {strides = array<i32>} : memref<8x256xf32, #tpu.memory_space<vmem>>, vector<8x256xf32>,
    return
  }
  func.func @transform_0(%arg0: i32) -> (i32, i32) {
    %c0_i32 = arith.constant 0 : i32
    %c0_i32_0 = arith.constant 0 : i32
    return %c0_i32, %arg0 : i32, i32
  }
  func.func @transform_1(%arg0: i32) -> (i32, i32) {
    %c0_i32 = arith.constant 0 : i32
    %c0_i32_0 = arith.constant 0 : i32
    return %c0_i32, %arg0 : i32, i32
  }
  func.func @transform_2(%arg0: i32) -> (i32, i32) {
    %c0_i32 = arith.constant 0 : i32
    %c0_i32_0 = arith.constant 0 : i32
    return %c0_i32, %arg0 : i32, i32
  }
}

</mosaic_0001>

<bundles_post_ra>
// kernel: tpu_custom_call.1
= control target key start
LH: loop header
LB: loop body
LE: loop exit
PB: predicated region body
PF: predicated region fallthrough
CT: control target
= control target key end

     0   :  { %8 = vsyncpa [#allocation3], 0  ;;  %s204_s0 = inlined_call_operand.hbm [shape: f32[8,256], index: 0, kind: input, shape index: {}]   ;;  %s205_s1 = inlined_call_operand.hbm [shape: f32[8,256], index: 1, kind: output, shape index: {0}]   ;;  %s206_s2 = inlined_call_operand.hbm [shape: f32[1,256], index: 2, kind: output, shape index: {1}]  }
   0x1   :  { %9 = vsyncpa [#allocation4], 0 }
   0x2   :  { %10 = vsyncpa [#allocation7], 0  ;;  %s176_s9 = smov [#allocation2]  }
   0x3   :  { %s17_s10 = sshll.u32 %s176_s9, 4  ;;  %s18_s10 = int_to_ptr.vmem [resolvable:$true] %s17_s10 }
   0x4   :  { %s118_s11 = scalar_lea.vmem %s18_s10, 256  ;;  %p123_p1 = scmp.lt.s32.totalorder %s18_s10, %s18_s10 }
   0x5   :  { %p119_p0 = scmp.ne.s32.totalorder %s18_s10, %s118_s11  ;;  %p124_p2 = scmp.lt.s32.totalorder %s118_s11, %s118_s11 }
   0x7   :  { %p125_p3 = por %p124_p2, %p123_p1 }
   0x9   :  { %p126_p4 = pnand %p125_p3, %p119_p0 }
   0xb   :  { %129 = shalt.err (!%p126_p4)
}
   0xc   :  { %20 = dma.hbm_to_vmem [thread:$0]  %s204_s0, 256, %s18_s10, [#allocation3]  }
   0xd   :  { %170 = dma.done.wait [#allocation3], 256  }
   0xe   :  { %171 = vsyncadd [#allocation3], 4294967040  ;;  %v24_v0 = vld [vmem:[#allocation2] sm:$0xff]  ;;  %v25_v1 = vld [vmem:[#allocation2 + $0x8] sm:$0xff]  ;;  %v177_v10 = vmov 1966171168   ;;  %v48_v12 = vlaneseq }
   0xf   :  { %v26_v2 = vand.u32 2147483647, %v24_v0  ;;  %v27_v3 = vand.u32 2147483647, %v25_v1  ;;  %v46_v11 = vunpack.c.l.s4 %v177_v10  ;;  %s178_s0 = smov [#allocation6]  }
  0x10   :  { %v49_v18 = vshrl.u32 %v48_v12, 7  ;;  %s89_s14 = sshll.u32 %s178_s0, 4  ;;  %vm62_vm0 = vcmp.lt.s32.totalorder %v48_v12, 256  ;;  %s90_s14 = int_to_ptr.vmem [resolvable:$true] %s89_s14 }
  0x11   :  { %v28_v4 = vrot.slane %v26_v2, 4  ;;  %v34_v5 = vrot.slane %v27_v3, 4  ;;  %v47_v17 = vunpack.c.0.s8 %v46_v11  ;;  %s130_s15 = scalar_lea.vmem %s90_s14, 32  ;;  %p135_p6 = scmp.lt.s32.totalorder %s90_s14, %s90_s14 }
  0x12   :  { %p131_p5 = scmp.ne.s32.totalorder %s90_s14, %s130_s15  ;;  %p136_p7 = scmp.lt.s32.totalorder %s130_s15, %s130_s15 }
  0x13   :  { %v29_v6 = vadd.f32 %v28_v4, %v26_v2  ;;  %v35_v7 = vadd.f32 %v34_v5, %v27_v3  ;;  %v50_v23 = vsub.s32 %v47_v17, %v49_v18 }
  0x14   :  { %p137_p8 = por %p136_p7, %p135_p6 }
  0x15   :  { %v30_v8 = vrot.slane %v29_v6, 2  ;;  %v36_v9 = vrot.slane %v35_v7, 2 }
  0x16   :  { %p138_p9 = pnand %p137_p8, %p131_p5 }
  0x17   :  { %v31_v13 = vadd.f32 %v30_v8, %v29_v6  ;;  %v37_v14 = vadd.f32 %v36_v9, %v35_v7 }
  0x19   :  { %v32_v15 = vrot.slane %v31_v13, 1  ;;  %v38_v16 = vrot.slane %v37_v14, 1 }
  0x1b   :  { %v33_v19 = vadd.f32 %v32_v15, %v31_v13  ;;  %v39_v20 = vadd.f32 %v38_v16, %v37_v14 }
  0x1d   :  { %v40_v21 = vmul.f32 0.125, %v33_v19  ;;  %v41_v22 = vmul.f32 0.125, %v39_v20 }
  0x1f   :  { %v44_v24 = vcombine.low %v40_v21, %v41_v22  ;;  %106 = vrcp.f32 %v40_v21 }
  0x20   :  { %108 = vrcp.f32 %v41_v22 }
  0x21   :  { %v51_v25 = vrot.slane %v44_v24, %v50_v23 }
  0x23   :  { %v58_v26 = vrot.slane %v51_v25, %v50_v23 }
  0x25   :  { %64 = vst.msk [vmem:[#allocation6] sm:$0x3] %vm62_vm0, %v58_v26 }
  0x26   :  { %141 = shalt.err (!%p138_p9)
}
  0x27   :  { %92 = dma.vmem_to_hbm [thread:$0]  %s90_s14, 32, %s206_s2, [#allocation7]  }
  0x28   :  { %s179_s18 = smov [#allocation5]  }
  0x29   :  { %s79_s19 = sshll.u32 %s179_s18, 4  ;;  %s80_s19 = int_to_ptr.vmem [resolvable:$true] %s79_s19 }
  0x2a   :  { %s150_s20 = scalar_lea.vmem %s80_s19, 256  ;;  %p155_p11 = scmp.lt.s32.totalorder %s80_s19, %s80_s19 }
  0x2b   :  { %p151_p10 = scmp.ne.s32.totalorder %s80_s19, %s150_s20  ;;  %p156_p12 = scmp.lt.s32.totalorder %s150_s20, %s150_s20 }
  0x2c   :  { %v107_v27 = vpop.eup %106 }
  0x2d   :  { %v109_v28 = vpop.eup %108  ;;  %v69_v29 = vmul.f32 %v107_v27, %v24_v0  ;;  %p157_p13 = por %p156_p12, %p155_p11 }
  0x2e   :  { %v70_v30 = vmul.f32 %v109_v28, %v25_v1 }
  0x2f   :  { %71 = vst [vmem:[#allocation5] sm:$0xff] %v69_v29  ;;  %p158_p0 = pnand %p157_p13, %p151_p10 }
  0x30   :  { %72 = vst [vmem:[#allocation5 + $0x8] sm:$0xff] %v70_v30 }
  0x31   :  { %161 = shalt.err (!%p158_p0)
}
  0x32   :  { %82 = dma.vmem_to_hbm [thread:$0]  %s80_s19, 256, %s205_s1, [#allocation4]  }
  0x33   :  { %172 = dma.done.wait [#allocation4], 256  }
  0x34   :  { %173 = vsyncadd [#allocation4], 4294967040 }
  0x35   :  { %174 = dma.done.wait [#allocation7], 32  }
  0x36   :  { %175 = vsyncadd [#allocation7], 4294967264 }
  0x37   :  { %99 = vsyncpa [#allocation3], 1 }
  0x38   :  { %100 = vsyncpa [#allocation4], 1 }
  0x39   :  { %101 = vsyncpa [#allocation7], 1 }

</bundles_post_ra>
